<compile_context>
chip_gen: v6e
topology: v6e:2x2x1
jax: 0.10.0
libtpu: 0.0.40
codegen_flags: <defaults>
</compile_context>

<pallas_src>
import functools

import jax
import jax.numpy as jnp
from jax.experimental import pallas as pl
from jax.experimental.pallas import tpu as pltpu


def _max_mean_pool_kernel(x_ref, o_ref, sum_acc, max_acc, *, inv_s, sub):
    # x_ref:   (Bt, St, H)   VMEM input tile (native dtype)
    # o_ref:   (Bt, 2, H)    VMEM output tile: row 0 = mean half, row 1 = max half
    # sum_acc: (Bt, sub, H)  f32 running-sum scratch
    # max_acc: (Bt, sub, H)  native-dtype running-max scratch
    k = pl.program_id(1)

    @pl.when(k == 0)
    def _init():
        sum_acc[...] = jnp.zeros_like(sum_acc)
        max_acc[...] = jnp.full_like(max_acc, -jnp.inf)

    x = x_ref[...]                       # native dtype, no full-tile upcast
    bt, st, h = x.shape
    if sub == 8:
        # Split the sublane axis on an (8, .) boundary -> layout-preserving view.
        # Reducing over axis=1 (a leading dim) is pure VPU: elementwise vreg
        # adds / maxes, no cross-sublane (XLU) movement in the hot loop.
        xg = x.reshape(bt, st // 8, 8, h)
        sum_acc[...] += jnp.sum(xg, axis=1, dtype=jnp.float32)
        max_acc[...] = jnp.maximum(max_acc[...], jnp.max(xg, axis=1))
    else:
        # Fallback (S not a multiple of 8, block == full sequence).
        sum_acc[...] += jnp.sum(x, axis=1, keepdims=True, dtype=jnp.float32)
        max_acc[...] = jnp.maximum(max_acc[...], jnp.max(x, axis=1, keepdims=True))

    @pl.when(k == pl.num_programs(1) - 1)
    def _finalize():
        # Single cross-sublane (8 -> 1) reduce, once per output block.
        mean = jnp.sum(sum_acc[...], axis=1) * inv_s          # (Bt, H) f32
        mx = jnp.max(max_acc[...], axis=1).astype(jnp.float32)
        o_ref[:, 0, :] = jax.nn.sigmoid(mean).astype(o_ref.dtype)   # mean half
        o_ref[:, 1, :] = jax.nn.sigmoid(mx).astype(o_ref.dtype)     # max half


def _divisors_desc(n: int):
    ds = set()
    i = 1
    while i * i <= n:
        if n % i == 0:
            ds.add(i)
            ds.add(n // i)
        i += 1
    return sorted(ds, reverse=True)


def _largest_divisor_le(n: int, target: int, multiple_of: int = 1):
    """Largest divisor of n that is <= target and a multiple of `multiple_of`."""
    for d in _divisors_desc(n):
        if d <= target and d % multiple_of == 0:
            return d
    return None


def _default_tile_budget() -> int:
    """Per-step input-tile byte budget (double-buffered by the pipeline)."""
    try:
        info = pltpu.get_tpu_info()
        vmem = getattr(info, "vmem_capacity_bytes", None)
        if vmem is not None and vmem >= 100 * 1024 * 1024:
            return 14 * 1024 * 1024   # v5e / v6e: 128 MiB physical VMEM
    except Exception:
        pass
    return 8 * 1024 * 1024            # safe on v7x (64 MiB physical / 32 MiB scoped)


def max_mean_pooling(x: jax.Array) -> jax.Array:
    """x: (B, S, H). Pools over dim=1. Returns (B, 2H) = sigmoid([mean | max])."""
    B, S, H = x.shape
    itemsize = jnp.dtype(x.dtype).itemsize
    tile_budget = _default_tile_budget()

    # Batch tile: cap so grid[0] >= 2 when B is large enough -> both v7x
    # TensorCores work the "parallel" axis (no effect on v5e/v6e).
    bt_target = min(256, B)
    if B >= 16:
        bt_target = min(bt_target, max(8, B // 2))
    Bt = _largest_divisor_le(B, bt_target) or 1

    # Sequence tile: largest multiple-of-8 divisor of S that fits the budget.
    # If only the full sequence is legal and the block would bust VMEM, shrink
    # the batch tile instead of emitting a VMEM-busting block.
    hard_cap = 16 * 1024 * 1024
    while True:
        st_target = max(1, tile_budget // max(1, Bt * H * itemsize))
        St = _largest_divisor_le(S, st_target, multiple_of=8)
        if St is None:
            St = S  # block == full dim is always a legal block shape
        if Bt * St * H * itemsize <= hard_cap or Bt == 1:
            break
        Bt = _largest_divisor_le(B, Bt - 1) or 1
    # TODO(synk): if S has no multiple-of-8 divisor and S*H alone exceeds VMEM,
    # a masked partial-sequence block would be needed; not implemented here.

    sub = 8 if St % 8 == 0 else 1
    grid = (B // Bt, S // St)

    # Explicit scoped-VMEM limit: double-buffered input + output + scratch,
    # plus headroom. Floor of 32 MiB clears v5e's 16 MiB scoped default and
    # stays under v7x's 64 MiB physical VMEM.
    in_bytes = Bt * St * H * itemsize
    out_bytes = Bt * 2 * H * itemsize
    scratch_bytes = Bt * sub * H * (4 + itemsize)
    vmem_limit = int(max(2 * in_bytes + 2 * out_bytes + scratch_bytes + (4 << 20),
                         32 << 20))

    kernel = functools.partial(_max_mean_pool_kernel, inv_s=1.0 / S, sub=sub)

    out3 = pl.pallas_call(
        kernel,
        out_shape=jax.ShapeDtypeStruct((B, 2, H), x.dtype),
        grid_spec=pltpu.PrefetchScalarGridSpec(
            num_scalar_prefetch=0,
            grid=grid,
            in_specs=[pl.BlockSpec((Bt, St, H), lambda i, k: (i, k, 0))],
            out_specs=pl.BlockSpec((Bt, 2, H), lambda i, k: (i, 0, 0)),
            scratch_shapes=[
                pltpu.VMEM((Bt, sub, H), jnp.float32),  # running sum (f32)
                pltpu.VMEM((Bt, sub, H), x.dtype),      # running max (native dtype)
            ],
        ),
        compiler_params=pltpu.CompilerParams(
            dimension_semantics=("parallel", "arbitrary"),
            vmem_limit_bytes=vmem_limit,
        ),
    )(x)
    # (B, 2, H) -> (B, 2H) = [mean | max]; contiguous reshape, free in XLA.
    return out3.reshape(B, 2 * H)


def _reference(x: jax.Array) -> jax.Array:
    mean_pooled = jnp.mean(x, axis=1)
    max_pooled = jnp.max(x, axis=1)
    return jax.nn.sigmoid(jnp.concatenate([mean_pooled, max_pooled], axis=-1))


if __name__ == "__main__":
    key = jax.random.PRNGKey(0)
    k0, k1, k2 = jax.random.split(key, 3)

    # Small shape matching the module's expected (batch, seq, hidden) layout.
    B, S, H = 2, 8, 32
    x = jax.random.normal(k0, (B, S, H), dtype=jnp.float32)
    out = jax.block_until_ready(max_mean_pooling(x))
    ref = _reference(x)
    assert out.shape == (B, 2 * H), out.shape
    assert jnp.allclose(out, ref, atol=1e-5, rtol=1e-5), "mismatch vs reference (small)"

    # Larger shape: multi-step accumulators + >=2 batch-axis grid steps.
    B2, S2, H2 = 16, 1024, 128
    x2 = jax.random.normal(k1, (B2, S2, H2), dtype=jnp.float32)
    out2 = jax.block_until_ready(max_mean_pooling(x2))
    ref2 = _reference(x2)
    assert out2.shape == (B2, 2 * H2), out2.shape
    assert jnp.allclose(out2, ref2, atol=1e-5, rtol=1e-5), "mismatch vs reference (tiled)"

    # bf16: exercises the native-dtype max accumulator path.
    B3, S3, H3 = 4, 64, 64
    x3 = jax.random.normal(k2, (B3, S3, H3), dtype=jnp.bfloat16)
    out3 = jax.block_until_ready(max_mean_pooling(x3))
    ref3 = _reference(x3.astype(jnp.float32))
    assert out3.shape == (B3, 2 * H3), out3.shape
    assert jnp.allclose(out3.astype(jnp.float32), ref3, atol=2e-2, rtol=2e-2), \
        "mismatch vs reference (bf16)"

    print("KERNEL_OK")
</pallas_src>

<mosaic_0001>
module attributes {stable_mosaic.version = 11 : i64} {
  func.func @_max_mean_pool_kernel(%arg0: i32, %arg1: i32, %arg2: memref<2x8x32xf32, #tpu.memory_space<vmem>>, %arg3: memref<2x2x32xf32, #tpu.memory_space<vmem>>, %arg4: memref<2x8x32xf32, #tpu.memory_space<vmem>>, %arg5: memref<2x8x32xf32, #tpu.memory_space<vmem>>) attributes {dimension_semantics = [#tpu.dimension_semantics<parallel>, #tpu.dimension_semantics<arbitrary>], iteration_bounds = array<i64: 1, 1>, scalar_prefetch = 0 : i64, scratch_operands = 2 : i64, tpu.core_type = #tpu.core_type<tc>, window_params = [{transform_indices = @transform_0, window_bounds = array<i64: 2, 8, 32>}, {transform_indices = @transform_1, window_bounds = array<i64: 2, 2, 32>}]} {
    %c0_i32 = arith.constant 0 : i32
    %0 = arith.cmpi eq, %arg1, %c0_i32 : i32
    %1 = arith.extui %0 : i1 to i32
    %c0_i32_0 = arith.constant 0 : i32
    %2 = arith.cmpi ne, %1, %c0_i32_0 : i32
    scf.if %2 {
      %cst_18 = arith.constant 0.000000e+00 : f32
      %16 = vector.broadcast %cst_18 : f32 to vector<2x8x32xf32>
      %c0_19 = arith.constant 0 : index
      %c0_20 = arith.constant 0 : index
      %c0_21 = arith.constant 0 : index
      %17 = vector.load %arg4[%c0_19, %c0_20, %c0_21] : memref<2x8x32xf32, #tpu.memory_space<vmem>>, vector<2x8x32xf32>
      tpu.vector_store %arg4[%c0_19, %c0_20, %c0_21], %16 {strides = array<i32>} : memref<2x8x32xf32, #tpu.memory_space<vmem>>, vector<2x8x32xf32>,
      %cst_22 = arith.constant 0xFF800000 : f32
      %18 = vector.broadcast %cst_22 : f32 to vector<2x8x32xf32>
      %c0_23 = arith.constant 0 : index
      %c0_24 = arith.constant 0 : index
      %c0_25 = arith.constant 0 : index
      %19 = vector.load %arg5[%c0_23, %c0_24, %c0_25] : memref<2x8x32xf32, #tpu.memory_space<vmem>>, vector<2x8x32xf32>
      tpu.vector_store %arg5[%c0_23, %c0_24, %c0_25], %18 {strides = array<i32>} : memref<2x8x32xf32, #tpu.memory_space<vmem>>, vector<2x8x32xf32>,
    } else {
    }
    %c0 = arith.constant 0 : index
    %c0_1 = arith.constant 0 : index
    %c0_2 = arith.constant 0 : index
    %3 = vector.load %arg2[%c0, %c0_1, %c0_2] : memref<2x8x32xf32, #tpu.memory_space<vmem>>, vector<2x8x32xf32>
    %4 = vector.shape_cast %3 : vector<2x8x32xf32> to vector<2x1x8x32xf32>
    %c0_3 = arith.constant 0 : index
    %c0_4 = arith.constant 0 : index
    %c0_5 = arith.constant 0 : index
    %5 = vector.load %arg4[%c0_3, %c0_4, %c0_5] : memref<2x8x32xf32, #tpu.memory_space<vmem>>, vector<2x8x32xf32>
    %cst = arith.constant dense<0.000000e+00> : vector<2x8x32xf32>
    %6 = vector.multi_reduction <add>, %4, %cst [1] : vector<2x1x8x32xf32> to vector<2x8x32xf32>
    %7 = arith.addf %5, %6 : vector<2x8x32xf32>
    %c0_6 = arith.constant 0 : index
    %c0_7 = arith.constant 0 : index
    %c0_8 = arith.constant 0 : index
    %8 = vector.load %arg4[%c0_6, %c0_7, %c0_8] : memref<2x8x32xf32, #tpu.memory_space<vmem>>, vector<2x8x32xf32>
    tpu.vector_store %arg4[%c0_6, %c0_7, %c0_8], %7 {strides = array<i32>} : memref<2x8x32xf32, #tpu.memory_space<vmem>>, vector<2x8x32xf32>,
    %c0_9 = arith.constant 0 : index
    %c0_10 = arith.constant 0 : index
    %c0_11 = arith.constant 0 : index
    %9 = vector.load %arg5[%c0_9, %c0_10, %c0_11] : memref<2x8x32xf32, #tpu.memory_space<vmem>>, vector<2x8x32xf32>
    %cst_12 = arith.constant dense<0xFF800000> : vector<2x8x32xf32>
    %10 = vector.multi_reduction <maximumf>, %4, %cst_12 [1] : vector<2x1x8x32xf32> to vector<2x8x32xf32>
    %11 = arith.maximumf %9, %10 : vector<2x8x32xf32>
    %c0_13 = arith.constant 0 : index
    %c0_14 = arith.constant 0 : index
    %c0_15 = arith.constant 0 : index
    %12 = vector.load %arg5[%c0_13, %c0_14, %c0_15] : memref<2x8x32xf32, #tpu.memory_space<vmem>>, vector<2x8x32xf32>
    tpu.vector_store %arg5[%c0_13, %c0_14, %c0_15], %11 {strides = array<i32>} : memref<2x8x32xf32, #tpu.memory_space<vmem>>, vector<2x8x32xf32>,
    %c0_i32_16 = arith.constant 0 : i32
    %13 = arith.cmpi eq, %arg1, %c0_i32_16 : i32
    %14 = arith.extui %13 : i1 to i32
    %c0_i32_17 = arith.constant 0 : i32
    %15 = arith.cmpi ne, %14, %c0_i32_17 : i32
    scf.if %15 {
      %c0_18 = arith.constant 0 : index
      %c0_19 = arith.constant 0 : index
      %c0_20 = arith.constant 0 : index
      %16 = vector.load %arg4[%c0_18, %c0_19, %c0_20] : memref<2x8x32xf32, #tpu.memory_space<vmem>>, vector<2x8x32xf32>
      %cst_21 = arith.constant dense<0.000000e+00> : vector<2x32xf32>
      %17 = vector.multi_reduction <add>, %16, %cst_21 [1] : vector<2x8x32xf32> to vector<2x32xf32>
      %cst_22 = arith.constant 1.250000e-01 : f32
      %18 = vector.broadcast %cst_22 : f32 to vector<2x32xf32>
      %19 = arith.mulf %17, %18 : vector<2x32xf32>
      %c0_23 = arith.constant 0 : index
      %c0_24 = arith.constant 0 : index
      %c0_25 = arith.constant 0 : index
      %20 = vector.load %arg5[%c0_23, %c0_24, %c0_25] : memref<2x8x32xf32, #tpu.memory_space<vmem>>, vector<2x8x32xf32>
      %cst_26 = arith.constant dense<0xFF800000> : vector<2x32xf32>
      %21 = vector.multi_reduction <maximumf>, %20, %cst_26 [1] : vector<2x8x32xf32> to vector<2x32xf32>
      %22 = arith.negf %19 : vector<2x32xf32>
      %23 = math.exp %22 : vector<2x32xf32>
      %cst_27 = arith.constant 1.000000e+00 : f32
      %24 = vector.broadcast %cst_27 : f32 to vector<2x32xf32>
      %25 = arith.addf %24, %23 : vector<2x32xf32>
      %26 = arith.divf %24, %25 : vector<2x32xf32>
      %c0_28 = arith.constant 0 : index
      %c0_29 = arith.constant 0 : index
      %c0_30 = arith.constant 0 : index
      %27 = vector.load %arg3[%c0_28, %c0_29, %c0_30] : memref<2x2x32xf32, #tpu.memory_space<vmem>>, vector<2x1x32xf32>
      %28 = vector.shape_cast %27 : vector<2x1x32xf32> to vector<2x32xf32>
      %29 = vector.shape_cast %26 : vector<2x32xf32> to vector<2x1x32xf32>
      tpu.vector_store %arg3[%c0_28, %c0_29, %c0_30], %29 {strides = array<i32>} : memref<2x2x32xf32, #tpu.memory_space<vmem>>, vector<2x1x32xf32>,
      %30 = arith.negf %21 : vector<2x32xf32>
      %31 = math.exp %30 : vector<2x32xf32>
      %cst_31 = arith.constant 1.000000e+00 : f32
      %32 = vector.broadcast %cst_31 : f32 to vector<2x32xf32>
      %33 = arith.addf %32, %31 : vector<2x32xf32>
      %34 = arith.divf %32, %33 : vector<2x32xf32>
      %c0_32 = arith.constant 0 : index
      %c1 = arith.constant 1 : index
      %c0_33 = arith.constant 0 : index
      %35 = vector.load %arg3[%c0_32, %c1, %c0_33] : memref<2x2x32xf32, #tpu.memory_space<vmem>>, vector<2x1x32xf32>
      %36 = vector.shape_cast %35 : vector<2x1x32xf32> to vector<2x32xf32>
      %37 = vector.shape_cast %34 : vector<2x32xf32> to vector<2x1x32xf32>
      tpu.vector_store %arg3[%c0_32, %c1, %c0_33], %37 {strides = array<i32>} : memref<2x2x32xf32, #tpu.memory_space<vmem>>, vector<2x1x32xf32>,
    } else {
    }
    return
  }
  func.func @transform_0(%arg0: i32, %arg1: i32) -> (i32, i32, i32) {
    %c0_i32 = arith.constant 0 : i32
    %c0_i32_0 = arith.constant 0 : i32
    return %arg0, %arg1, %c0_i32 : i32, i32, i32
  }
  func.func @transform_1(%arg0: i32, %arg1: i32) -> (i32, i32, i32) {
    %c0_i32 = arith.constant 0 : i32
    %c0_i32_0 = arith.constant 0 : i32
    %c0_i32_1 = arith.constant 0 : i32
    return %arg0, %c0_i32, %c0_i32_0 : i32, i32, i32
  }
}

</mosaic_0001>

<bundles_post_ra>
// kernel: tpu_custom_call.1
= control target key start
LH: loop header
LB: loop body
LE: loop exit
PB: predicated region body
PF: predicated region fallthrough
CT: control target
= control target key end

     0   :  { %6 = vsyncpa [#allocation5], 0  ;;  %s240_s0 = inlined_call_operand.hbm [shape: f32[2,8,32], index: 0, kind: input, shape index: {}]   ;;  %s241_s1 = inlined_call_operand.hbm [shape: f32[2,2,32], index: 1, kind: output, shape index: {}]  }
   0x1   :  { %7 = vsyncpa [#allocation6], 0  ;;  %s204_s6 = smov [#allocation4]  }
   0x2   :  { %s13_s7 = sshll.u32 %s204_s6, 4  ;;  %s14_s7 = int_to_ptr.vmem [resolvable:$true] %s13_s7 }
   0x3   :  { %s168_s8 = scalar_lea.vmem %s14_s7, 256  ;;  %p173_p1 = scmp.lt.s32.totalorder %s14_s7, %s14_s7 }
   0x4   :  { %p169_p0 = scmp.ne.s32.totalorder %s14_s7, %s168_s8  ;;  %p174_p2 = scmp.lt.s32.totalorder %s168_s8, %s168_s8 }
   0x6   :  { %p175_p3 = por %p174_p2, %p173_p1 }
   0x8   :  { %p176_p4 = pnand %p175_p3, %p169_p0 }
   0xa   :  { %179 = shalt.err (!%p176_p4)
}
   0xb   :  { %s205_s9 = smov 128   ;;  %s206_s10 = smov 8  }
   0xc   :  { %19 = dma.hbm_to_vmem [thread:$0]  %s240_s0, 256, %s14_s7, [#allocation5], %s205_s9, %s205_s9, %s206_s10  }
   0xd   :  { %200 = dma.done.wait [#allocation5], 256  }
   0xe   :  { %201 = vsyncadd [#allocation5], 4294967040  ;;  %vm27_vm0 = vcmask 261120   ;;  %v207_v0 = vmov 0.0   ;;  %v208_v1 = vmov -inf   ;;  %v32_v2 = vld [vmem:[#allocation4] sm:$0xff] }
   0xf   :  { %28 = vst.msk [vmem:[#allocation2] sm:$0xff] %vm27_vm0, %v207_v0  ;;  %29 = vst.msk [vmem:[#allocation2 + $0x8] sm:$0xff] %vm27_vm0, %v207_v0  ;;  %v33_v3 = vld [vmem:[#allocation4 + $0x8] sm:$0xff]  ;;  %vm98_vm1 = vcmask 253952   ;;  %s209_s0 = smov [#allocation7]  }
  0x10   :  { %30 = vst.msk [vmem:[#allocation3] sm:$0xff] %vm27_vm0, %v208_v1  ;;  %31 = vst.msk [vmem:[#allocation3 + $0x8] sm:$0xff] %vm27_vm0, %v208_v1  ;;  %s120_s13 = sshll.u32 %s209_s0, 4  ;;  %s121_s13 = int_to_ptr.vmem [resolvable:$true] %s120_s13 }
  0x11   :  { %s180_s14 = scalar_lea.vmem %s121_s13, 64  ;;  %p185_p6 = scmp.lt.s32.totalorder %s121_s13, %s121_s13 }
  0x12   :  { %p181_p5 = scmp.ne.s32.totalorder %s121_s13, %s180_s14  ;;  %p186_p7 = scmp.lt.s32.totalorder %s180_s14, %s180_s14 }
  0x14   :  { %p187_p8 = por %p186_p7, %p185_p6 }
  0x16   :  { %v34_v4 = vld [vmem:[#allocation2] sm:$0xff]  ;;  %v35_v5 = vld [vmem:[#allocation2 + $0x8] sm:$0xff]  ;;  %p188_p9 = pnand %p187_p8, %p181_p5 }
  0x17   :  { %v43_v6 = vld [vmem:[#allocation3] sm:$0xff]  ;;  %v38_v7 = vadd.f32 %v34_v4, %v32_v2  ;;  %v39_v8 = vadd.f32 %v35_v5, %v33_v3  ;;  %v44_v10 = vld [vmem:[#allocation3 + $0x8] sm:$0xff] }
  0x18   :  { %v45_v9 = vmax.f32 %v43_v6, %v32_v2  ;;  %v46_v11 = vmax.f32 %v44_v10, %v33_v3 }
  0x19   :  { %41 = vst.msk [vmem:[#allocation2] sm:$0xff] %vm27_vm0, %v38_v7  ;;  %42 = vst.msk [vmem:[#allocation2 + $0x8] sm:$0xff] %vm27_vm0, %v39_v8 }
  0x1a   :  { %47 = vst.msk [vmem:[#allocation3] sm:$0xff] %vm27_vm0, %v45_v9  ;;  %48 = vst.msk [vmem:[#allocation3 + $0x8] sm:$0xff] %vm27_vm0, %v46_v11 }
  0x20   :  { %v52_v12 = vld [vmem:[#allocation2] sm:$0xff]  ;;  %v53_v13 = vld [vmem:[#allocation2 + $0x8] sm:$0xff] }
  0x21   :  { %v70_v14 = vld [vmem:[#allocation3] sm:$0xff]  ;;  %v54_v15 = vsel %vm27_vm0, %v52_v12, 0.0  ;;  %v61_v16 = vsel %vm27_vm0, %v53_v13, 0.0  ;;  %v71_v18 = vld [vmem:[#allocation3 + $0x8] sm:$0xff] }
  0x22   :  { %v72_v17 = vsel %vm27_vm0, %v70_v14, -inf  ;;  %v55_v19 = vrot.slane %v54_v15, 4  ;;  %v62_v20 = vrot.slane %v61_v16, 4  ;;  %v79_v22 = vsel %vm27_vm0, %v71_v18, -inf }
  0x23   :  { %v73_v21 = vrot.slane %v72_v17, 4  ;;  %v80_v23 = vrot.slane %v79_v22, 4 }
  0x24   :  { %v56_v24 = vadd.f32 %v55_v19, %v54_v15  ;;  %v63_v25 = vadd.f32 %v62_v20, %v61_v16 }
  0x25   :  { %v74_v26 = vmax.f32 %v72_v17, %v73_v21  ;;  %v81_v27 = vmax.f32 %v79_v22, %v80_v23 }
  0x26   :  { %v57_v28 = vrot.slane %v56_v24, 2  ;;  %v64_v29 = vrot.slane %v63_v25, 2 }
  0x27   :  { %v75_v30 = vrot.slane %v74_v26, 2  ;;  %v82_v31 = vrot.slane %v81_v27, 2 }
  0x28   :  { %v58_v32 = vadd.f32 %v57_v28, %v56_v24  ;;  %v65_v33 = vadd.f32 %v64_v29, %v63_v25 }
  0x29   :  { %v76_v34 = vmax.f32 %v74_v26, %v75_v30  ;;  %v83_v35 = vmax.f32 %v81_v27, %v82_v31 }
  0x2a   :  { %v59_v36 = vrot.slane %v58_v32, 1  ;;  %v66_v37 = vrot.slane %v65_v33, 1 }
  0x2b   :  { %v77_v38 = vrot.slane %v76_v34, 1  ;;  %v84_v39 = vrot.slane %v83_v35, 1 }
  0x2c   :  { %v60_v41 = vadd.f32 %v59_v36, %v58_v32  ;;  %v67_v42 = vadd.f32 %v66_v37, %v65_v33 }
  0x2d   :  { %v78_v40 = vmax.f32 %v76_v34, %v77_v38  ;;  %v85_v43 = vmax.f32 %v83_v35, %v84_v39 }
  0x2e   :  { %v132_v45 = vmul.f32 -0.125, %v60_v41  ;;  %v133_v46 = vmul.f32 -0.125, %v67_v42 }
  0x2f   :  { %v134_v44 = vmul.f32 -1.442695, %v78_v40  ;;  %v135_v47 = vmul.f32 -1.442695, %v85_v43 }
  0x30   :  { %v88_v48 = vmul.f32 1.442695, %v132_v45  ;;  %v90_v49 = vmul.f32 1.442695, %v133_v46 }
  0x31   :  { %144 = vpow2.f32 %v134_v44 }
  0x32   :  { %146 = vpow2.f32 %v135_v47 }
  0x33   :  { %148 = vpow2.f32 %v88_v48 }
  0x34   :  { %150 = vpow2.f32 %v90_v49 }
  0x3e   :  { %v145_v50 = vpop.eup %144 }
  0x3f   :  { %v147_v51 = vpop.eup %146  ;;  %v107_v52 = vadd.f32 1.0, %v145_v50 }
  0x40   :  { %v149_v53 = vpop.eup %148  ;;  %v108_v54 = vadd.f32 1.0, %v147_v51 }
  0x41   :  { %v151_v55 = vpop.eup %150  ;;  %152 = vrcp.f32 %v107_v52  ;;  %v92_v56 = vadd.f32 1.0, %v149_v53 }
  0x42   :  { %154 = vrcp.f32 %v108_v54  ;;  %v93_v57 = vadd.f32 1.0, %v151_v55 }
  0x43   :  { %156 = vrcp.f32 %v92_v56 }
  0x44   :  { %158 = vrcp.f32 %v93_v57 }
  0x4e   :  { %v153_v58 = vpop.eup %152 }
  0x4f   :  { %v155_v59 = vpop.eup %154  ;;  %113 = vst.msk [vmem:[#allocation7 + $0x1] sm:$0x1] %vm98_vm1, %v153_v58 }
  0x50   :  { %v157_v60 = vpop.eup %156  ;;  %114 = vst.msk [vmem:[#allocation7 + $0x3] sm:$0x1] %vm98_vm1, %v155_v59 }
  0x51   :  { %v159_v61 = vpop.eup %158  ;;  %99 = vst.msk [vmem:[#allocation7] sm:$0x1] %vm98_vm1, %v157_v60 }
  0x52   :  { %100 = vst.msk [vmem:[#allocation7 + $0x2] sm:$0x1] %vm98_vm1, %v159_v61 }
  0x53   :  { %191 = shalt.err (!%p188_p9)
}
  0x54   :  { %s210_s15 = smov 32   ;;  %s211_s16 = smov 2  }
  0x55   :  { %126 = dma.vmem_to_hbm [thread:$0]  %s121_s13, 64, %s241_s1, [#allocation6], %s210_s15, %s210_s15, %s211_s16  }
  0x56   :  { %202 = dma.done.wait [#allocation6], 64  }
  0x57   :  { %203 = vsyncadd [#allocation6], 4294967232 }
  0x58   :  { %130 = vsyncpa [#allocation5], 1 }
  0x59   :  { %131 = vsyncpa [#allocation6], 1 }

</bundles_post_ra>
